<compile_context>
chip_gen: v7x
topology: tpu7x:2x2x1
jax: 0.10.0
libtpu: 0.0.40
codegen_flags: <defaults>
</compile_context>

<pallas_src>
import functools

import jax
import jax.numpy as jnp
from jax.experimental import pallas as pl
from jax.experimental.pallas import tpu as pltpu


TILE_B = 128  # batch tile along lanes; a multiple of 128 suits v5e/v6e/v7x


def mlp_kernel(x_ref,
               w1_ref, b1_ref,
               w2_ref, b2_ref,
               w3_ref, b3_ref,
               w4_ref, b4_ref,
               o_ref):
    # Activations are (features, batch_tile): batch along lanes.
    x = x_ref[...]                                                    # (n_in, TB)
    h = jnp.dot(w1_ref[...], x, preferred_element_type=jnp.float32)   # (32, TB)
    h = jnp.maximum(h + b1_ref[...], 0.0)
    h = jnp.dot(w2_ref[...], h, preferred_element_type=jnp.float32)   # (128, TB)
    h = jnp.maximum(h + b2_ref[...], 0.0)
    h = jnp.dot(w3_ref[...], h, preferred_element_type=jnp.float32)   # (16, TB)
    h = jnp.maximum(h + b3_ref[...], 0.0)
    # Layer 4 (16 -> 1) on the VPU: multiply by the (16, 1) weight column and reduce
    # over sublanes. Result is directly a lane-dense (1, TB) row.
    logit = jnp.sum(h * w4_ref[...], axis=0, keepdims=True) + b4_ref[...]
    o_ref[...] = jax.nn.sigmoid(logit)


@functools.partial(jax.jit, static_argnames=("tile_b",))
def mlp_forward(x, params, tile_b=TILE_B):
    batch, n_inputs = x.shape
    num_tiles = pl.cdiv(batch, tile_b)
    padded = num_tiles * tile_b

    # Batch along lanes, zero-padded to a full tile: (n_inputs, padded_batch).
    xt = jnp.zeros((n_inputs, padded), jnp.float32).at[:, :batch].set(x.T)

    (w1, b1), (w2, b2), (w3, b3), (w4, b4) = params
    # (in, out)/(1, out) -> (out, in)/(out, 1) for the batch-on-lanes orientation.
    w1t, w2t, w3t = w1.T, w2.T, w3.T
    b1t, b2t, b3t = b1.T, b2.T, b3.T
    w4c = w4      # (16, 1) column, consumed as-is by the VPU path
    b4t = b4.T    # (1, 1)

    const = lambda i: (0, 0)                       # weights/biases: one resident block
    full = lambda a: pl.BlockSpec(a.shape, const)

    out = pl.pallas_call(
        mlp_kernel,
        out_shape=jax.ShapeDtypeStruct((1, padded), jnp.float32),
        grid=(num_tiles,),
        in_specs=[
            pl.BlockSpec((n_inputs, tile_b), lambda i: (0, i)),   # x tile per step
            full(w1t), full(b1t),
            full(w2t), full(b2t),
            full(w3t), full(b3t),
            full(w4c), full(b4t),
        ],
        out_specs=pl.BlockSpec((1, tile_b), lambda i: (0, i)),    # lane-dense output
        compiler_params=pltpu.CompilerParams(
            dimension_semantics=("parallel",),
        ),
    )(xt, w1t, b1t, w2t, b2t, w3t, b3t, w4c, b4t)

    return out[0, :batch].reshape(batch, 1)


# ---------------------------------------------------------------------------
# Init matching the PyTorch module (weights stored as (in, out), bias as (1, out))
# ---------------------------------------------------------------------------
def kaiming_uniform(key, fan_in, fan_out):
    # kaiming_uniform_(nonlinearity='relu'): bound = sqrt(6 / fan_in)
    bound = jnp.sqrt(6.0 / fan_in)
    return jax.random.uniform(key, (fan_in, fan_out), jnp.float32, -bound, bound)


def xavier_uniform(key, fan_in, fan_out):
    bound = jnp.sqrt(6.0 / (fan_in + fan_out))
    return jax.random.uniform(key, (fan_in, fan_out), jnp.float32, -bound, bound)


def linear_bias(key, fan_in, fan_out):
    # PyTorch Linear default bias init: U(-1/sqrt(fan_in), 1/sqrt(fan_in))
    bound = 1.0 / jnp.sqrt(fan_in)
    return jax.random.uniform(key, (1, fan_out), jnp.float32, -bound, bound)


def init_params(key, n_inputs):
    ks = jax.random.split(key, 8)
    dims = [(n_inputs, 32), (32, 128), (128, 16), (16, 1)]
    params = []
    for i, (fi, fo) in enumerate(dims):
        wkey, bkey = ks[2 * i], ks[2 * i + 1]
        w = kaiming_uniform(wkey, fi, fo) if i < 3 else xavier_uniform(wkey, fi, fo)
        b = linear_bias(bkey, fi, fo)
        params.append((w, b))
    return params


def mlp_reference(x, params):
    h = x
    for i, (w, b) in enumerate(params):
        h = jnp.dot(h, w) + b
        h = jnp.maximum(h, 0.0) if i < 3 else jax.nn.sigmoid(h)
    return h


if __name__ == "__main__":
    key = jax.random.PRNGKey(0)
    kx, kp = jax.random.split(key)

    batch, n_inputs = 8, 32
    x = jax.random.normal(kx, (batch, n_inputs), jnp.float32)
    params = init_params(kp, n_inputs)

    out = mlp_forward(x, params)
    out = jax.block_until_ready(out)

    ref = mlp_reference(x, params)
    assert out.shape == (batch, 1)
    assert jnp.allclose(out, ref, atol=1e-5, rtol=1e-5), float(jnp.max(jnp.abs(out - ref)))

    print("KERNEL_OK")
</pallas_src>

<mosaic_0001>
module attributes {stable_mosaic.version = 11 : i64} {
  func.func @mlp_kernel(%arg0: i32, %arg1: memref<32x128xf32, #tpu.memory_space<vmem>>, %arg2: memref<32x32xf32, #tpu.memory_space<vmem>>, %arg3: memref<32x1xf32, #tpu.memory_space<vmem>>, %arg4: memref<128x32xf32, #tpu.memory_space<vmem>>, %arg5: memref<128x1xf32, #tpu.memory_space<vmem>>, %arg6: memref<16x128xf32, #tpu.memory_space<vmem>>, %arg7: memref<16x1xf32, #tpu.memory_space<vmem>>, %arg8: memref<16x1xf32, #tpu.memory_space<vmem>>, %arg9: memref<1x1xf32, #tpu.memory_space<vmem>>, %arg10: memref<1x128xf32, #tpu.memory_space<vmem>>) attributes {dimension_semantics = [#tpu.dimension_semantics<parallel>], iteration_bounds = array<i64: 1>, scalar_prefetch = 0 : i64, scratch_operands = 0 : i64, tpu.core_type = #tpu.core_type<tc>, window_params = [{transform_indices = @transform_0, window_bounds = array<i64: 32, 128>}, {pipeline_mode = #tpu.pipeline_mode<synchronous>, transform_indices = @transform_1, window_bounds = array<i64: 32, 32>}, {pipeline_mode = #tpu.pipeline_mode<synchronous>, transform_indices = @transform_2, window_bounds = array<i64: 32, 1>}, {pipeline_mode = #tpu.pipeline_mode<synchronous>, transform_indices = @transform_3, window_bounds = array<i64: 128, 32>}, {pipeline_mode = #tpu.pipeline_mode<synchronous>, transform_indices = @transform_4, window_bounds = array<i64: 128, 1>}, {pipeline_mode = #tpu.pipeline_mode<synchronous>, transform_indices = @transform_5, window_bounds = array<i64: 16, 128>}, {pipeline_mode = #tpu.pipeline_mode<synchronous>, transform_indices = @transform_6, window_bounds = array<i64: 16, 1>}, {pipeline_mode = #tpu.pipeline_mode<synchronous>, transform_indices = @transform_7, window_bounds = array<i64: 16, 1>}, {pipeline_mode = #tpu.pipeline_mode<synchronous>, transform_indices = @transform_8, window_bounds = array<i64: 1, 1>}, {transform_indices = @transform_9, window_bounds = array<i64: 1, 128>}]} {
    %c0 = arith.constant 0 : index
    %c0_0 = arith.constant 0 : index
    %0 = vector.load %arg1[%c0, %c0_0] : memref<32x128xf32, #tpu.memory_space<vmem>>, vector<32x128xf32>
    %c0_1 = arith.constant 0 : index
    %c0_2 = arith.constant 0 : index
    %1 = vector.load %arg2[%c0_1, %c0_2] : memref<32x32xf32, #tpu.memory_space<vmem>>, vector<32x32xf32>
    %cst = arith.constant dense<0.000000e+00> : vector<32x128xf32>
    %2 = tpu.matmul %1, %0, %cst {dimension_numbers = #tpu.dot_dimension_numbers<[1], [0], [0], [1], [0, 0, 1, 1], [], []>} : vector<32x32xf32>, vector<32x128xf32>, vector<32x128xf32> -> vector<32x128xf32>
    %c0_3 = arith.constant 0 : index
    %c0_4 = arith.constant 0 : index
    %3 = vector.load %arg3[%c0_3, %c0_4] : memref<32x1xf32, #tpu.memory_space<vmem>>, vector<32x1xf32>
    %4 = vector.broadcast %3 : vector<32x1xf32> to vector<32x128xf32>
    %5 = arith.addf %2, %4 : vector<32x128xf32>
    %cst_5 = arith.constant 0.000000e+00 : f32
    %6 = vector.broadcast %cst_5 : f32 to vector<32x128xf32>
    %7 = arith.maximumf %5, %6 : vector<32x128xf32>
    %c0_6 = arith.constant 0 : index
    %c0_7 = arith.constant 0 : index
    %8 = vector.load %arg4[%c0_6, %c0_7] : memref<128x32xf32, #tpu.memory_space<vmem>>, vector<128x32xf32>
    %cst_8 = arith.constant dense<0.000000e+00> : vector<128x128xf32>
    %9 = tpu.matmul %8, %7, %cst_8 {dimension_numbers = #tpu.dot_dimension_numbers<[1], [0], [0], [1], [0, 0, 1, 1], [], []>} : vector<128x32xf32>, vector<32x128xf32>, vector<128x128xf32> -> vector<128x128xf32>
    %c0_9 = arith.constant 0 : index
    %c0_10 = arith.constant 0 : index
    %10 = vector.load %arg5[%c0_9, %c0_10] : memref<128x1xf32, #tpu.memory_space<vmem>>, vector<128x1xf32>
    %11 = vector.broadcast %10 : vector<128x1xf32> to vector<128x128xf32>
    %12 = arith.addf %9, %11 : vector<128x128xf32>
    %cst_11 = arith.constant 0.000000e+00 : f32
    %13 = vector.broadcast %cst_11 : f32 to vector<128x128xf32>
    %14 = arith.maximumf %12, %13 : vector<128x128xf32>
    %c0_12 = arith.constant 0 : index
    %c0_13 = arith.constant 0 : index
    %15 = vector.load %arg6[%c0_12, %c0_13] : memref<16x128xf32, #tpu.memory_space<vmem>>, vector<16x128xf32>
    %cst_14 = arith.constant dense<0.000000e+00> : vector<16x128xf32>
    %16 = tpu.matmul %15, %14, %cst_14 {dimension_numbers = #tpu.dot_dimension_numbers<[1], [0], [0], [1], [0, 0, 1, 1], [], []>} : vector<16x128xf32>, vector<128x128xf32>, vector<16x128xf32> -> vector<16x128xf32>
    %c0_15 = arith.constant 0 : index
    %c0_16 = arith.constant 0 : index
    %17 = vector.load %arg7[%c0_15, %c0_16] : memref<16x1xf32, #tpu.memory_space<vmem>>, vector<16x1xf32>
    %18 = vector.broadcast %17 : vector<16x1xf32> to vector<16x128xf32>
    %19 = arith.addf %16, %18 : vector<16x128xf32>
    %cst_17 = arith.constant 0.000000e+00 : f32
    %20 = vector.broadcast %cst_17 : f32 to vector<16x128xf32>
    %21 = arith.maximumf %19, %20 : vector<16x128xf32>
    %c0_18 = arith.constant 0 : index
    %c0_19 = arith.constant 0 : index
    %22 = vector.load %arg8[%c0_18, %c0_19] : memref<16x1xf32, #tpu.memory_space<vmem>>, vector<16x1xf32>
    %23 = vector.broadcast %22 : vector<16x1xf32> to vector<16x128xf32>
    %24 = arith.mulf %21, %23 : vector<16x128xf32>
    %cst_20 = arith.constant dense<0.000000e+00> : vector<128xf32>
    %25 = vector.multi_reduction <add>, %24, %cst_20 [0] : vector<16x128xf32> to vector<128xf32>
    %26 = vector.shape_cast %25 : vector<128xf32> to vector<1x128xf32>
    %c0_21 = arith.constant 0 : index
    %c0_22 = arith.constant 0 : index
    %27 = vector.load %arg9[%c0_21, %c0_22] : memref<1x1xf32, #tpu.memory_space<vmem>>, vector<1x1xf32>
    %28 = vector.broadcast %27 : vector<1x1xf32> to vector<1x128xf32>
    %29 = arith.addf %26, %28 : vector<1x128xf32>
    %30 = arith.negf %29 : vector<1x128xf32>
    %31 = math.exp %30 : vector<1x128xf32>
    %cst_23 = arith.constant 1.000000e+00 : f32
    %32 = vector.broadcast %cst_23 : f32 to vector<1x128xf32>
    %33 = arith.addf %32, %31 : vector<1x128xf32>
    %34 = arith.divf %32, %33 : vector<1x128xf32>
    %c0_24 = arith.constant 0 : index
    %c0_25 = arith.constant 0 : index
    %35 = vector.load %arg10[%c0_24, %c0_25] : memref<1x128xf32, #tpu.memory_space<vmem>>, vector<1x128xf32>
    tpu.vector_store %arg10[%c0_24, %c0_25], %34 {strides = array<i32>} : memref<1x128xf32, #tpu.memory_space<vmem>>, vector<1x128xf32>,
    return
  }
  func.func @transform_0(%arg0: i32) -> (i32, i32) {
    %c0_i32 = arith.constant 0 : i32
    %c0_i32_0 = arith.constant 0 : i32
    return %c0_i32, %arg0 : i32, i32
  }
  func.func @transform_1(%arg0: i32) -> (i32, i32) {
    %c0_i32 = arith.constant 0 : i32
    %c0_i32_0 = arith.constant 0 : i32
    %c0_i32_1 = arith.constant 0 : i32
    return %c0_i32, %c0_i32_0 : i32, i32
  }
  func.func @transform_2(%arg0: i32) -> (i32, i32) {
    %c0_i32 = arith.constant 0 : i32
    %c0_i32_0 = arith.constant 0 : i32
    %c0_i32_1 = arith.constant 0 : i32
    return %c0_i32, %c0_i32_0 : i32, i32
  }
  func.func @transform_3(%arg0: i32) -> (i32, i32) {
    %c0_i32 = arith.constant 0 : i32
    %c0_i32_0 = arith.constant 0 : i32
    %c0_i32_1 = arith.constant 0 : i32
    return %c0_i32, %c0_i32_0 : i32, i32
  }
  func.func @transform_4(%arg0: i32) -> (i32, i32) {
    %c0_i32 = arith.constant 0 : i32
    %c0_i32_0 = arith.constant 0 : i32
    %c0_i32_1 = arith.constant 0 : i32
    return %c0_i32, %c0_i32_0 : i32, i32
  }
  func.func @transform_5(%arg0: i32) -> (i32, i32) {
    %c0_i32 = arith.constant 0 : i32
    %c0_i32_0 = arith.constant 0 : i32
    %c0_i32_1 = arith.constant 0 : i32
    return %c0_i32, %c0_i32_0 : i32, i32
  }
  func.func @transform_6(%arg0: i32) -> (i32, i32) {
    %c0_i32 = arith.constant 0 : i32
    %c0_i32_0 = arith.constant 0 : i32
    %c0_i32_1 = arith.constant 0 : i32
    return %c0_i32, %c0_i32_0 : i32, i32
  }
  func.func @transform_7(%arg0: i32) -> (i32, i32) {
    %c0_i32 = arith.constant 0 : i32
    %c0_i32_0 = arith.constant 0 : i32
    %c0_i32_1 = arith.constant 0 : i32
    return %c0_i32, %c0_i32_0 : i32, i32
  }
  func.func @transform_8(%arg0: i32) -> (i32, i32) {
    %c0_i32 = arith.constant 0 : i32
    %c0_i32_0 = arith.constant 0 : i32
    %c0_i32_1 = arith.constant 0 : i32
    return %c0_i32, %c0_i32_0 : i32, i32
  }
  func.func @transform_9(%arg0: i32) -> (i32, i32) {
    %c0_i32 = arith.constant 0 : i32
    %c0_i32_0 = arith.constant 0 : i32
    return %c0_i32, %arg0 : i32, i32
  }
}

</mosaic_0001>

<bundles_post_ra>
// kernel: mlp_forward.1
= control target key start
LH: loop header
LB: loop body
LE: loop exit
PB: predicated region body
PF: predicated region fallthrough
CT: control target
= control target key end

     0   :  { %vm66_vm0 = vcmask 261120   ;;  %v826_v3 = vmov 0   ;;  %s1053_s0 = inlined_call_operand.vmem [shape: f32[32,128], index: 0, kind: input, shape index: {}]   ;;  %s1054_s1 = inlined_call_operand.vmem [shape: f32[32,32], index: 1, kind: input, shape index: {}]   ;;  %s1055_s2 = inlined_call_operand.vmem [shape: f32[32,1], index: 2, kind: input, shape index: {}]   ;;  %s1056_s8 = inlined_call_operand.<no memory space> [shape: f32[1,1], index: 8, kind: input, shape index: {}]   ;;  %s1057_s4 = inlined_call_operand.vmem [shape: f32[128,1], index: 4, kind: input, shape index: {}]   ;;  %s1058_s6 = inlined_call_operand.vmem [shape: f32[16,1], index: 6, kind: input, shape index: {}]   ;;  %s1059_s7 = inlined_call_operand.vmem [shape: f32[16,1], index: 7, kind: input, shape index: {}]   ;;  %s1060_s3 = inlined_call_operand.vmem [shape: f32[128,32], index: 3, kind: input, shape index: {}]   ;;  %s1061_s5 = inlined_call_operand.vmem [shape: f32[16,128], index: 5, kind: input, shape index: {}]   ;;  %s1062_s9 = inlined_call_operand.vmem [shape: f32[1,128], index: 9, kind: output, shape index: {}]  }
   0x1   :  { %v34_v0 = vld [vmem:[%s1053_s0] sm:$0xff]  ;;  %v35_v1 = vld [vmem:[%s1053_s0 + $0x8] sm:$0xff]  ;;  %v36_v2 = vld [vmem:[%s1053_s0 + $0x10] sm:$0xff]  ;;  %820 = vset.pattern.permute.xlu0 %v826_v3  ;;  %821 = vset.pattern.permute.xlu1 %v826_v3  ;;  %v14_v4 = vstv %s1056_s8 }
   0x2   :  { %v771_v5 = vpack.c.bf16 %v35_v1, %v34_v0  ;;  %v37_v6 = vld [vmem:[%s1053_s0 + $0x18] sm:$0xff]  ;;  %v38_v7 = vld [vmem:[%s1054_s1] sm:$0xff]  ;;  %15 = vst [vmem:[#allocation2] sm:$0x1] %v14_v4  ;;  %v44_v10 = vld [vmem:[%s1055_s2 + $0x10] sm:$0xff] }
   0x3   :  { %v775_v8 = vpack.c.bf16 %v37_v6, %v36_v2  ;;  %698 = vmatprep.mubr.msk.f32.mxu0 %vm66_vm0, %v38_v7  ;;  %v42_v9 = vld [vmem:[%s1055_s2] sm:$0xff]  ;;  %v43_v11 = vld [vmem:[%s1055_s2 + $0x8] sm:$0xff]  ;;  %58 = vperm.xlu1 %821, %v44_v10   ;;  %v45_v12 = vld [vmem:[%s1055_s2 + $0x18] sm:$0xff] }
   0x4   :  { %772 = vmatprep.subr.bf16.mxu0 %v771_v5  ;;  %48 = vperm.xlu0 %820, %v42_v9   ;;  %v39_v13 = vld [vmem:[%s1054_s1 + $0x8] sm:$0xff]  ;;  %v184_v14 = vld [vmem:[%s1057_s4] sm:$0xff]  ;;  %v40_v15 = vld [vmem:[%s1054_s1 + $0x10] sm:$0xff] }
   0x5   :  { %774 = vmatpush3.bf16.msra.mxu0 %v771_v5  ;;  %v185_v16 = vld [vmem:[%s1057_s4 + $0x8] sm:$0xff]  ;;  %v41_v17 = vld [vmem:[%s1054_s1 + $0x18] sm:$0xff]  ;;  %v186_v18 = vld [vmem:[%s1057_s4 + $0x10] sm:$0xff] }
   0x6   :  { %776 = vmatprep.subr.bf16.mxu0 %v775_v8  ;;  %v187_v19 = vld [vmem:[%s1057_s4 + $0x18] sm:$0xff]  ;;  %v188_v20 = vld [vmem:[%s1057_s4 + $0x20] sm:$0xff]  ;;  %v189_v21 = vld [vmem:[%s1057_s4 + $0x28] sm:$0xff] }
   0x7   :  { %63 = vperm.xlu1 %821, %v45_v12   ;;  %v190_v22 = vld [vmem:[%s1057_s4 + $0x30] sm:$0xff]  ;;  %v191_v23 = vld [vmem:[%s1057_s4 + $0x38] sm:$0xff]  ;;  %v192_v24 = vld [vmem:[%s1057_s4 + $0x40] sm:$0xff] }
   0x8   :  { %53 = vperm.xlu0 %820, %v43_v11   ;;  %v193_v25 = vld [vmem:[%s1057_s4 + $0x48] sm:$0xff]  ;;  %v194_v26 = vld [vmem:[%s1057_s4 + $0x50] sm:$0xff]  ;;  %v195_v27 = vld [vmem:[%s1057_s4 + $0x58] sm:$0xff] }
   0x9   :  { %778 = vmatpush3.bf16.msra.mxu0 %v775_v8  ;;  %v196_v28 = vld [vmem:[%s1057_s4 + $0x60] sm:$0xff]  ;;  %v197_v29 = vld [vmem:[%s1057_s4 + $0x68] sm:$0xff]  ;;  %v198_v30 = vld [vmem:[%s1057_s4 + $0x70] sm:$0xff] }
   0xa   :  { %v199_v31 = vld [vmem:[%s1057_s4 + $0x78] sm:$0xff]  ;;  %v491_v32 = vld [vmem:[%s1058_s6] sm:$0xff]  ;;  %v492_v33 = vld [vmem:[%s1058_s6 + $0x8] sm:$0xff] }
   0xb   :  { %207 = vperm.xlu1 %821, %v185_v16   ;;  %v580_v34 = vld [vmem:[%s1059_s7] sm:$0xff]  ;;  %v581_v35 = vld [vmem:[%s1059_s7 + $0x8] sm:$0xff]  ;;  %v170_v57 = vld [vmem:[%s1060_s3 + $0x10] sm:$0xff] }
   0xc   :  { %699 = vmatmul.mubr.msk.f32.vlgmr.msra.gmra.mrb[0].mxu0 %vm66_vm0, %v39_v13  ;;  %202 = vperm.xlu0 %820, %v184_v14   ;;  %v601_v36 = vld [vmem:[#allocation2] sm:$0x1]  ;;  %v169_v56 = vld [vmem:[%s1060_s3 + $0x8] sm:$0xff]  ;;  %v171_v58 = vld [vmem:[%s1060_s3 + $0x18] sm:$0xff] }
   0xd   :  { %701 = vmatprep.mubr.msk.f32.mxu0 %vm66_vm0, %v40_v15  ;;  %v168_v37 = vld [vmem:[%s1060_s3] sm:$0xff]  ;;  %v173_v60 = vld [vmem:[%s1060_s3 + $0x28] sm:$0xff]  ;;  %v174_v61 = vld [vmem:[%s1060_s3 + $0x30] sm:$0xff] }
   0xe   :  { %712 = vmatprep.mubr.msk.f32.mxu1 %vm66_vm0, %v168_v37  ;;  %v172_v59 = vld [vmem:[%s1060_s3 + $0x20] sm:$0xff]  ;;  %v175_v62 = vld [vmem:[%s1060_s3 + $0x38] sm:$0xff]  ;;  %v177_v0 = vld [vmem:[%s1060_s3 + $0x48] sm:$0xff] }
   0xf   :  { %217 = vperm.xlu1 %821, %v187_v19   ;;  %v176_v63 = vld [vmem:[%s1060_s3 + $0x40] sm:$0xff]  ;;  %v178_v1 = vld [vmem:[%s1060_s3 + $0x50] sm:$0xff]  ;;  %v179_v2 = vld [vmem:[%s1060_s3 + $0x58] sm:$0xff] }
  0x10   :  { %702 = vmatmul.mubr.msk.f32.gmra.mrb[2].mxu0 %vm66_vm0, %v41_v17  ;;  %212 = vperm.xlu0 %820, %v186_v18   ;;  %v180_v3 = vld [vmem:[%s1060_s3 + $0x60] sm:$0xff]  ;;  %v181_v4 = vld [vmem:[%s1060_s3 + $0x68] sm:$0xff]  ;;  %v182_v5 = vld [vmem:[%s1060_s3 + $0x70] sm:$0xff] }
  0x11   :  { %v183_v6 = vld [vmem:[%s1060_s3 + $0x78] sm:$0xff]  ;;  %v489_v7 = vld [vmem:[%s1061_s5] sm:$0xff] }
  0x12   :  { %768 = vmatprep.mubr.f32.mxu0 %v489_v7 }
  0x13   :  { %227 = vperm.xlu1 %821, %v189_v21  }
  0x14   :  { %222 = vperm.xlu0 %820, %v188_v20  }
  0x17   :  { %237 = vperm.xlu1 %821, %v191_v23  }
  0x18   :  { %232 = vperm.xlu0 %820, %v190_v22  }
  0x1b   :  { %247 = vperm.xlu1 %821, %v193_v25  }
  0x1c   :  { %242 = vperm.xlu0 %820, %v192_v24  }
  0x1f   :  { %257 = vperm.xlu1 %821, %v195_v27  }
  0x20   :  { %252 = vperm.xlu0 %820, %v194_v26  }
  0x23   :  { %267 = vperm.xlu1 %821, %v197_v29  }
  0x24   :  { %262 = vperm.xlu0 %820, %v196_v28  }
  0x27   :  { %277 = vperm.xlu1 %821, %v199_v31  }
  0x28   :  { %272 = vperm.xlu0 %820, %v198_v30  }
  0x2b   :  { %500 = vperm.xlu1 %821, %v492_v33  }
  0x2c   :  { %495 = vperm.xlu0 %820, %v491_v32  }
  0x2f   :  { %589 = vperm.xlu1 %821, %v581_v35  }
  0x30   :  { %584 = vperm.xlu0 %820, %v580_v34  }
  0x34   :  { %604 = vperm.xlu0 %820, %v601_v36  }
  0x82   :  { %v59_v39 = vpop.permute.xlu1 %58 }
  0x83   :  { %v49_v38 = vpop.permute.xlu0 %48 }
  0x86   :  { %v64_v46 = vpop.permute.xlu1 %63 }
  0x87   :  { %v54_v40 = vpop.permute.xlu0 %53 }
  0x8a   :  { %v208_v8 = vpop.permute.xlu1 %207 }
  0x8b   :  { %v203_v9 = vpop.permute.xlu0 %202 }
  0x8e   :  { %v218_v10 = vpop.permute.xlu1 %217 }
  0x8f   :  { %v213_v11 = vpop.permute.xlu0 %212 }
  0x92   :  { %v228_v12 = vpop.permute.xlu1 %227 }
  0x93   :  { %v223_v13 = vpop.permute.xlu0 %222 }
  0x96   :  { %v238_v19 = vpop.permute.xlu1 %237 }
  0x97   :  { %v233_v22 = vpop.permute.xlu0 %232 }
  0x9a   :  { %v248_v32 = vpop.permute.xlu1 %247 }
  0x9b   :  { %v243_v35 = vpop.permute.xlu0 %242 }
  0xdf   :  { %v700_v41 = vpop.f32.mrb[0].mxu0 }
  0xe0   :  { %v151_v42 = vadd.f32 %v700_v41, %v54_v40  ;;  %v145_v43 = vpop.f32.mrb[1].mxu0 }
  0xe1   :  { %v146_v44 = vadd.f32 %v145_v43, %v49_v38 }
  0xe2   :  { %v165_v45 = vmax.f32 %v151_v42, 0.0 }
  0xe3   :  { %v164_v47 = vmax.f32 %v146_v44, 0.0  ;;  %v703_v48 = vpop.f32.mrb[2].mxu0  ;;  %v258_v44 = vpop.permute.xlu1 %257 }
  0xe4   :  { %v161_v49 = vadd.f32 %v703_v48, %v64_v46  ;;  %v155_v50 = vpop.f32.mrb[3].mxu0 }
  0xe5   :  { %v156_v51 = vadd.f32 %v155_v50, %v59_v39  ;;  %v779_v52 = vpack.c.bf16 %v165_v45, %v164_v47  ;;  %v253_v47 = vpop.permute.xlu0 %252 }
  0xe6   :  { %v167_v53 = vmax.f32 %v161_v49, 0.0 }
  0xe7   :  { %v166_v54 = vmax.f32 %v156_v51, 0.0  ;;  %780 = vmatprep.subr.bf16.mxu1 %v779_v52 }
  0xe8   :  { %782 = vmatpush3.bf16.msra.mxu1 %v779_v52 }
  0xe9   :  { %v783_v55 = vpack.c.bf16 %v167_v53, %v166_v54 }
  0xeb   :  { %784 = vmatprep.subr.bf16.mxu1 %v783_v55 }
  0xec   :  { %786 = vmatpush3.bf16.msra.mxu1 %v783_v55 }
  0xef   :  { %713 = vmatmul.mubr.msk.f32.vlgmr.msra.gmra.mrb[0].mxu1 %vm66_vm0, %v169_v56 }
  0xf0   :  { %715 = vmatprep.mubr.msk.f32.mxu1 %vm66_vm0, %v170_v57  ;;  %v268_v57 = vpop.permute.xlu1 %267 }
  0xf3   :  { %716 = vmatmul.mubr.msk.f32.gmra.mrb[2].mxu1 %vm66_vm0, %v171_v58 }
  0xf4   :  { %718 = vmatprep.mubr.msk.f32.mxu1 %vm66_vm0, %v172_v59 }
  0xf7   :  { %719 = vmatmul.mubr.msk.f32.gmra.mrb[4].mxu1 %vm66_vm0, %v173_v60  ;;  %v263_v60 = vpop.permute.xlu0 %262 }
  0xf8   :  { %721 = vmatprep.mubr.msk.f32.mxu1 %vm66_vm0, %v174_v61 }
  0xfb   :  { %722 = vmatmul.mubr.msk.f32.gmra.mrb[6].mxu1 %vm66_vm0, %v175_v62 }
  0xfc   :  { %724 = vmatprep.mubr.msk.f32.mxu1 %vm66_vm0, %v176_v63 }
  0xff   :  { %725 = vmatmul.mubr.msk.f32.gmra.mrb[8].mxu1 %vm66_vm0, %v177_v0 }
 0x100   :  { %727 = vmatprep.mubr.msk.f32.mxu1 %vm66_vm0, %v178_v1 }
 0x103   :  { %728 = vmatmul.mubr.msk.f32.gmra.mrb[10].mxu1 %vm66_vm0, %v179_v2 }
 0x104   :  { %730 = vmatprep.mubr.msk.f32.mxu1 %vm66_vm0, %v180_v3 }
 0x107   :  { %731 = vmatmul.mubr.msk.f32.gmra.mrb[12].mxu1 %vm66_vm0, %v181_v4 }
 0x108   :  { %733 = vmatprep.mubr.msk.f32.mxu1 %vm66_vm0, %v182_v5  ;;  %v278_v5 = vpop.permute.xlu1 %277 }
 0x10b   :  { %734 = vmatmul.mubr.msk.f32.gmra.mrb[14].mxu1 %vm66_vm0, %v183_v6 }
 0x1c2   :  { %v714_v14 = vpop.f32.mrb[0].mxu1 }
 0x1c3   :  { %v400_v15 = vadd.f32 %v714_v14, %v208_v8  ;;  %v394_v16 = vpop.f32.mrb[1].mxu1  ;;  %v273_v8 = vpop.permute.xlu0 %272 }
 0x1c4   :  { %v395_v17 = vadd.f32 %v394_v16, %v203_v9  ;;  %v490_v16 = vld [vmem:[%s1061_s5 + $0x8] sm:$0xff] }
 0x1c5   :  { %v474_v18 = vmax.f32 %v400_v15, 0.0 }
 0x1c6   :  { %v473_v20 = vmax.f32 %v395_v17, 0.0  ;;  %v717_v21 = vpop.f32.mrb[2].mxu1  ;;  %v501_v17 = vpop.permute.xlu1 %500 }
 0x1c7   :  { %v410_v23 = vadd.f32 %v717_v21, %v218_v10  ;;  %v404_v24 = vpop.f32.mrb[3].mxu1 }
 0x1c8   :  { %v787_v25 = vpack.c.bf16 %v474_v18, %v473_v20  ;;  %v405_v26 = vadd.f32 %v404_v24, %v213_v11  ;;  %v496_v18 = vpop.permute.xlu0 %495 }
 0x1c9   :  { %v476_v27 = vmax.f32 %v410_v23, 0.0 }
 0x1ca   :  { %v475_v28 = vmax.f32 %v405_v26, 0.0  ;;  %v720_v29 = vpop.f32.mrb[4].mxu1  ;;  %788 = vmatprep.subr.bf16.mxu0 %v787_v25  ;;  %v590_v24 = vpop.permute.xlu1 %589 }
 0x1cb   :  { %v420_v30 = vadd.f32 %v720_v29, %v228_v12  ;;  %v414_v31 = vpop.f32.mrb[5].mxu1  ;;  %790 = vmatpush3.bf16.msra.mxu0 %v787_v25  ;;  %v607_v29 = vlaneseq }
 0x1cc   :  { %v791_v33 = vpack.c.bf16 %v476_v27, %v475_v28  ;;  %v415_v34 = vadd.f32 %v414_v31, %v223_v13  ;;  %v585_v26 = vpop.permute.xlu0 %584 }
 0x1cd   :  { %v478_v36 = vmax.f32 %v420_v30, 0.0 }
 0x1ce   :  { %v477_v37 = vmax.f32 %v415_v34, 0.0  ;;  %v723_v38 = vpop.f32.mrb[6].mxu1  ;;  %792 = vmatprep.subr.bf16.mxu0 %v791_v33 }
 0x1cf   :  { %v430_v39 = vadd.f32 %v723_v38, %v238_v19  ;;  %v424_v40 = vpop.f32.mrb[7].mxu1  ;;  %794 = vmatpush3.bf16.msra.mxu0 %v791_v33 }
 0x1d0   :  { %v795_v41 = vpack.c.bf16 %v478_v36, %v477_v37  ;;  %v425_v42 = vadd.f32 %v424_v40, %v233_v22  ;;  %v605_v37 = vpop.permute.xlu0 %604 }
 0x1d1   :  { %v480_v43 = vmax.f32 %v430_v39, 0.0 }
 0x1d2   :  { %v479_v45 = vmax.f32 %v425_v42, 0.0  ;;  %v726_v46 = vpop.f32.mrb[8].mxu1  ;;  %796 = vmatprep.subr.bf16.mxu0 %v795_v41 }
 0x1d3   :  { %v440_v48 = vadd.f32 %v726_v46, %v248_v32  ;;  %v434_v49 = vpop.f32.mrb[9].mxu1  ;;  %798 = vmatpush3.bf16.msra.mxu0 %v795_v41  ;;  %v608_v32 = vshrl.u32 %v607_v29, 7 }
 0x1d4   :  { %v799_v50 = vpack.c.bf16 %v480_v43, %v479_v45  ;;  %v435_v51 = vadd.f32 %v434_v49, %v243_v35 }
 0x1d5   :  { %v482_v52 = vmax.f32 %v440_v48, 0.0  ;;  %v609_v35 = vsub.s32 0, %v608_v32 }
 0x1d6   :  { %v481_v53 = vmax.f32 %v435_v51, 0.0  ;;  %v729_v54 = vpop.f32.mrb[10].mxu1  ;;  %800 = vmatprep.subr.bf16.mxu0 %v799_v50 }
 0x1d7   :  { %v450_v55 = vadd.f32 %v729_v54, %v258_v44  ;;  %v444_v56 = vpop.f32.mrb[11].mxu1  ;;  %802 = vmatpush3.bf16.msra.mxu0 %v799_v50  ;;  %v610_v39 = vrot.slane %v605_v37, %v609_v35 }
 0x1d8   :  { %v803_v58 = vpack.c.bf16 %v482_v52, %v481_v53  ;;  %v445_v59 = vadd.f32 %v444_v56, %v253_v47 }
 0x1d9   :  { %v484_v61 = vmax.f32 %v450_v55, 0.0 }
 0x1da   :  { %v483_v62 = vmax.f32 %v445_v59, 0.0  ;;  %v732_v63 = vpop.f32.mrb[12].mxu1  ;;  %804 = vmatprep.subr.bf16.mxu0 %v803_v58 }
 0x1db   :  { %v460_v0 = vadd.f32 %v732_v63, %v268_v57  ;;  %v454_v1 = vpop.f32.mrb[13].mxu1  ;;  %806 = vmatpush3.bf16.msra.mxu0 %v803_v58 }
 0x1dc   :  { %v807_v2 = vpack.c.bf16 %v484_v61, %v483_v62  ;;  %v455_v3 = vadd.f32 %v454_v1, %v263_v60 }
 0x1dd   :  { %v486_v4 = vmax.f32 %v460_v0, 0.0 }
 0x1de   :  { %v485_v6 = vmax.f32 %v455_v3, 0.0  ;;  %v735_v7 = vpop.f32.mrb[14].mxu1  ;;  %808 = vmatprep.subr.bf16.mxu0 %v807_v2 }
 0x1df   :  { %v470_v9 = vadd.f32 %v735_v7, %v278_v5  ;;  %v464_v10 = vpop.f32.mrb[15].mxu1  ;;  %810 = vmatpush3.bf16.msra.mxu0 %v807_v2 }
 0x1e0   :  { %v811_v11 = vpack.c.bf16 %v486_v4, %v485_v6  ;;  %v465_v12 = vadd.f32 %v464_v10, %v273_v8 }
 0x1e1   :  { %v488_v13 = vmax.f32 %v470_v9, 0.0 }
 0x1e2   :  { %v487_v14 = vmax.f32 %v465_v12, 0.0  ;;  %812 = vmatprep.subr.bf16.mxu0 %v811_v11 }
 0x1e3   :  { %814 = vmatpush3.bf16.msra.mxu0 %v811_v11 }
 0x1e4   :  { %v815_v15 = vpack.c.bf16 %v488_v13, %v487_v14 }
 0x1e6   :  { %816 = vmatprep.subr.bf16.mxu0 %v815_v15 }
 0x1e7   :  { %818 = vmatpush3.bf16.msra.mxu0 %v815_v15 }
 0x1ea   :  { %769 = vmatmul.mubr.f32.vlgmr.msra.gmra.mrb[4].mxu0 %v490_v16 }
 0x2bd   :  { %v770_v19 = vpop.f32.mrb[4].mxu0 }
 0x2be   :  { %v575_v20 = vadd.f32 %v770_v19, %v501_v17  ;;  %v569_v21 = vpop.f32.mrb[5].mxu0 }
 0x2bf   :  { %v570_v22 = vadd.f32 %v569_v21, %v496_v18 }
 0x2c0   :  { %v579_v23 = vmax.f32 %v575_v20, 0.0 }
 0x2c1   :  { %v578_v25 = vmax.f32 %v570_v22, 0.0 }
 0x2c2   :  { %v593_v27 = vmul.f32 %v590_v24, %v579_v23 }
 0x2c3   :  { %v592_v28 = vmul.f32 %v585_v26, %v578_v25 }
 0x2c5   :  { %v594_v30 = vadd.f32 %v593_v27, %v592_v28 }
 0x2c7   :  { %v595_v31 = vrot.slane %v594_v30, 4 }
 0x2c9   :  { %v596_v33 = vadd.f32 %v595_v31, %v594_v30 }
 0x2cb   :  { %v597_v34 = vrot.slane %v596_v33, 2 }
 0x2cd   :  { %v598_v36 = vadd.f32 %v597_v34, %v596_v33 }
 0x2cf   :  { %v599_v38 = vrot.slane %v598_v36, 1 }
 0x2d1   :  { %v600_v40 = vadd.f32 %v599_v38, %v598_v36 }
 0x2d3   :  { %v611_v41 = vadd.f32 %v610_v39, %v600_v40 }
 0x2d5   :  { %v643_v42 = vmul.f32 -1.442695, %v611_v41 }
 0x2d7   :  { %822 = vpow2.f32 %v643_v42 }
 0x2e1   :  { %v823_v43 = vpop.eup %822 }
 0x2e2   :  { %v615_v44 = vadd.f32 1.0, %v823_v43 }
 0x2e4   :  { %824 = vrcp.f32 %v615_v44 }
 0x2ee   :  { %v825_v45 = vpop.eup %824 }
 0x2ef   :  { %618 = vst [vmem:[%s1062_s9] sm:$0x1] %v825_v45 }

</bundles_post_ra>
